<compile_context>
chip_gen: v7x
topology: tpu7x:2x2x1
jax: 0.10.0
libtpu: 0.0.40
codegen_flags: <defaults>
</compile_context>

<pallas_src>
import functools
import math

import jax
import jax.numpy as jnp
from jax.experimental import pallas as pl
from jax.experimental.pallas import tpu as pltpu


def _round_up(x, m):
    return ((x + m - 1) // m) * m


def _cdiv(a, b):
    return -(-a // b)


def _sublane(dtype):
    # Sub-32-bit dtypes pack rows along sublanes: 8 rows/f32, 16/bf16, 32/int8-fp8.
    return {4: 8, 2: 16, 1: 32}.get(jnp.dtype(dtype).itemsize, 8)


def _vmem_capacity_bytes():
    try:
        return int(pltpu.get_tpu_info().vmem_capacity_bytes)
    except Exception:
        return 64 * 1024 * 1024  # conservative fallback (fits every generation incl. v7x)


def highway_kernel(x_ref, w_ref, b_ref, o_ref, *, col_tiled):
    """One (row-tile, output-column-tile) step of the highway layer.

    x_ref: [rows, D_pad]   input row tile (compute dtype), resident across the column axis
    w_ref: [D_pad, 2*tn]   fused [W1_cols | W2_cols] for this column tile
    b_ref: [1, 2*tn]       fused [b1_cols | b2_cols] (f32)
    o_ref: [rows, tn]      output tile
    """
    tn = o_ref.shape[-1]

    x = x_ref[...]  # native compute dtype for the MXU operands

    # Single fused MXU pass: [rows, D_pad] @ [D_pad, 2*tn] -> [rows, 2*tn], f32 accumulation.
    ht = jnp.dot(x, w_ref[...], preferred_element_type=jnp.float32) + b_ref[...]

    H = jnp.maximum(ht[:, :tn], 0.0)   # ReLU (VPU)
    T = jax.nn.sigmoid(ht[:, tn:])     # gate (exp/recip on EUP)

    if col_tiled:
        j = pl.program_id(1)
        col0 = pl.multiple_of(j * tn, 128)          # 128-aligned lane offset
        xj = x_ref[:, pl.ds(col0, tn)]
    else:
        xj = x                                      # tn == D_pad: whole tile, static

    xf = xj.astype(jnp.float32)                     # only the tn-wide residual is promoted
    o_ref[...] = (xf + T * (H - xf)).astype(o_ref.dtype)   # == H*T + x*(1 - T)


def highway_net(x, w1, b1, w2, b2, *, block_rows=1024, compute_dtype=jnp.bfloat16,
                vmem_limit_bytes=None):
    """x: [N, D]; w1, w2: [D, D] stored as x @ W (i.e. PyTorch weight.T); b1, b2: [D]."""
    N, D = x.shape
    assert w1.shape == (D, D) and w2.shape == (D, D)
    assert b1.shape == (D,) and b2.shape == (D,)

    out_dtype = x.dtype
    cdt = jnp.dtype(compute_dtype)
    cbytes = cdt.itemsize
    obytes = jnp.dtype(out_dtype).itemsize

    if vmem_limit_bytes is None:
        # Generation-aware budget with headroom for compiler-managed scratch:
        # ~54 MiB on v7x (64 MiB physical), ~108 MiB on v5e/v6e (128 MiB physical).
        vmem_limit_bytes = int(_vmem_capacity_bytes() * 0.85)

    # Lane-dense feature dim (multiple of 128).
    D_pad = _round_up(max(D, 128), 128)

    # Row tile: dtype-aware sublane rounding, >= 2 tiles so both v7x TCs get work,
    # sized ~ceil(N/tiles) so padded dead rows stay under one sublane per tile.
    sub = _sublane(cdt)
    n_row_tiles = max(2, _cdiv(N, max(block_rows, sub)))
    row_tile = _round_up(_cdiv(N, n_row_tiles), sub)

    # Output-feature tiling: keep the fused [W1|W2] weight resident when it fits in
    # roughly half the VMEM budget, otherwise stream [D_pad, 2*tn] column tiles
    # (bounds both the weight footprint and the f32 [rows, 2*tn] intermediate).
    weight_budget = vmem_limit_bytes // 2
    if D_pad * 2 * D_pad * cbytes <= weight_budget:
        tn = D_pad
    else:
        tn = (weight_budget // (2 * D_pad * 2 * cbytes)) // 128 * 128
        tn = int(max(128, min(tn, D_pad)))
        while D_pad % tn:          # tn must divide D_pad; 128 always does
            tn -= 128
    col_tiles = D_pad // tn

    # Shrink the row tile if the estimated working set exceeds the VMEM budget.
    def est_vmem(rt):
        w_bufs = 1 if col_tiles == 1 else 2
        w = w_bufs * (D_pad * 2 * tn * cbytes + 2 * tn * 4)
        xb = 2 * rt * D_pad * cbytes            # x double buffer
        ob = 2 * rt * tn * obytes               # out double buffer
        inter = 3 * rt * 2 * tn * 4             # f32 matmul result + H/T temporaries
        return w + xb + ob + inter

    while row_tile > sub and est_vmem(row_tile) > vmem_limit_bytes:
        row_tile = max(sub, _round_up(row_tile // 2, sub))
    n_row_tiles = _cdiv(N, row_tile)
    N_pad = n_row_tiles * row_tile

    # Pad once in the wrapper.  Zero-padded columns give H=0, x=0 -> out=0 in the
    # 'x + T*(H-x)' form and are sliced off; padded rows are likewise discarded.
    x_p = jnp.pad(x, ((0, N_pad - N), (0, D_pad - D))).astype(cdt)
    w1_p = jnp.pad(w1, ((0, D_pad - D), (0, D_pad - D))).astype(cdt)
    w2_p = jnp.pad(w2, ((0, D_pad - D), (0, D_pad - D))).astype(cdt)
    b1_p = jnp.pad(b1, (0, D_pad - D)).astype(jnp.float32)
    b2_p = jnp.pad(b2, (0, D_pad - D)).astype(jnp.float32)

    # Pack so column tile j holds [W1[:, j*tn:(j+1)*tn] | W2[:, j*tn:(j+1)*tn]].
    w12 = jnp.concatenate(
        [w1_p.reshape(D_pad, col_tiles, tn), w2_p.reshape(D_pad, col_tiles, tn)],
        axis=2).reshape(D_pad, col_tiles * 2 * tn)
    b12 = jnp.concatenate(
        [b1_p.reshape(col_tiles, tn), b2_p.reshape(col_tiles, tn)],
        axis=1).reshape(1, col_tiles * 2 * tn)

    kernel = functools.partial(highway_kernel, col_tiled=(col_tiles > 1))

    def _spec(shape, index_map, buffered):
        if buffered is None:
            return pl.BlockSpec(shape, index_map)
        return pl.BlockSpec(shape, index_map, pipeline_mode=buffered)

    def build(single_buffer_weights):
        # Constant-index weight/bias blocks: single buffer (no pointless double-buffering).
        wmode = pl.Buffered(1) if (single_buffer_weights and col_tiles == 1) else None
        return pl.pallas_call(
            kernel,
            out_shape=jax.ShapeDtypeStruct((N_pad, D_pad), out_dtype),
            grid_spec=pltpu.PrefetchScalarGridSpec(
                num_scalar_prefetch=0,
                grid=(n_row_tiles, col_tiles),
                in_specs=[
                    pl.BlockSpec((row_tile, D_pad), lambda i, j: (i, 0)),   # x tile (resident over j)
                    _spec((D_pad, 2 * tn), lambda i, j: (0, j), wmode),     # fused weight tile
                    _spec((1, 2 * tn), lambda i, j: (0, j), wmode),         # fused bias tile
                ],
                out_specs=pl.BlockSpec((row_tile, tn), lambda i, j: (i, j)),
            ),
            compiler_params=pltpu.CompilerParams(
                dimension_semantics=("parallel", "arbitrary"),  # row tiles shard across TCs
                vmem_limit_bytes=vmem_limit_bytes,
            ),
        )

    try:
        out_p = build(True)(x_p, w12, b12)
    except Exception:
        # Fallback if this jax version rejects Buffered(1) on a constant-index block.
        out_p = build(False)(x_p, w12, b12)

    return out_p[:N, :D]


def init_params(key, in_dims):
    """Deterministic init mimicking torch.nn.Linear defaults, with fc2.bias = -1."""
    out_dims = in_dims
    k1, k2, k3 = jax.random.split(key, 3)
    bound = 1.0 / math.sqrt(in_dims)
    # Stored as [D_in, D_out] (= PyTorch weight.T) so the kernel does x @ W.
    w1 = jax.random.uniform(k1, (in_dims, out_dims), jnp.float32, -bound, bound)
    b1 = jax.random.uniform(k2, (out_dims,), jnp.float32, -bound, bound)
    w2 = jax.random.uniform(k3, (in_dims, out_dims), jnp.float32, -bound, bound)
    b2 = jnp.full((out_dims,), -1.0, dtype=jnp.float32)  # torch.nn.init.constant_(fc2.bias, -1.0)
    return w1, b1, w2, b2


def highway_ref(x, w1, b1, w2, b2):
    """Plain-JAX reference for correctness check."""
    H = jnp.maximum(x @ w1 + b1, 0.0)
    T = jax.nn.sigmoid(x @ w2 + b2)
    return H * T + x * (1.0 - T)


if __name__ == "__main__":
    key = jax.random.PRNGKey(0)

    # Primary demo: small shapes consistent with the module (batch=2, seq=8, hidden=32).
    batch, seq, hidden = 2, 8, 32
    kx, kp = jax.random.split(key)
    x3d = jax.random.normal(kx, (batch, seq, hidden), dtype=jnp.float32)
    x = x3d.reshape(batch * seq, hidden)  # HighwayNet acts on the feature dim; flatten rows.

    w1, b1, w2, b2 = init_params(kp, hidden)
    ref = highway_ref(x, w1, b1, w2, b2)

    # f32-operand MXU path: tight match against the plain-JAX reference.
    out_f32 = jax.block_until_ready(
        highway_net(x, w1, b1, w2, b2, compute_dtype=jnp.float32))
    assert out_f32.shape == x.shape and out_f32.dtype == x.dtype
    assert jnp.allclose(out_f32, ref, atol=1e-5, rtol=1e-5), "mismatch vs reference (f32)"

    # Default bf16-operand MXU path (native MXU peak); f32 accumulation, looser tolerance.
    out_bf16 = jax.block_until_ready(highway_net(x, w1, b1, w2, b2))
    assert out_bf16.shape == x.shape and out_bf16.dtype == x.dtype
    assert jnp.allclose(out_bf16, ref, atol=5e-2, rtol=5e-2), "mismatch vs reference (bf16)"

    # Non-aligned N and D exercise the wrapper padding / ragged-row-tile path.
    kx2, kp2 = jax.random.split(kp)
    x2 = jax.random.normal(kx2, (3 * 7, 48), dtype=jnp.float32)
    p2 = init_params(kp2, 48)
    out2 = jax.block_until_ready(highway_net(x2, *p2, compute_dtype=jnp.float32))
    ref2 = highway_ref(x2, *p2)
    assert out2.shape == x2.shape
    assert jnp.allclose(out2, ref2, atol=1e-5, rtol=1e-5), "mismatch vs reference (padded case)"

    print("KERNEL_OK")
</pallas_src>

<mosaic_0001>
module attributes {stable_mosaic.version = 11 : i64} {
  func.func @highway_kernel(%arg0: i32, %arg1: i32, %arg2: memref<8x128xf32, #tpu.memory_space<vmem>>, %arg3: memref<128x256xf32, #tpu.memory_space<vmem>>, %arg4: memref<1x256xf32, #tpu.memory_space<vmem>>, %arg5: memref<8x128xf32, #tpu.memory_space<vmem>>) attributes {dimension_semantics = [#tpu.dimension_semantics<parallel>, #tpu.dimension_semantics<arbitrary>], iteration_bounds = array<i64: 2, 1>, scalar_prefetch = 0 : i64, scratch_operands = 0 : i64, tpu.core_type = #tpu.core_type<tc>, window_params = [{transform_indices = @transform_0, window_bounds = array<i64: 8, 128>}, {pipeline_mode = #tpu.pipeline_mode<synchronous>, transform_indices = @transform_1, window_bounds = array<i64: 128, 256>}, {pipeline_mode = #tpu.pipeline_mode<synchronous>, transform_indices = @transform_2, window_bounds = array<i64: 1, 256>}, {transform_indices = @transform_3, window_bounds = array<i64: 8, 128>}]} {
    %c0 = arith.constant 0 : index
    %c0_0 = arith.constant 0 : index
    %0 = vector.load %arg2[%c0, %c0_0] : memref<8x128xf32, #tpu.memory_space<vmem>>, vector<8x128xf32>
    %c0_1 = arith.constant 0 : index
    %c0_2 = arith.constant 0 : index
    %1 = vector.load %arg3[%c0_1, %c0_2] : memref<128x256xf32, #tpu.memory_space<vmem>>, vector<128x256xf32>
    %cst = arith.constant dense<0.000000e+00> : vector<8x256xf32>
    %2 = tpu.matmul %0, %1, %cst {dimension_numbers = #tpu.dot_dimension_numbers<[1], [0], [0], [1], [0, 0, 1, 1], [], []>} : vector<8x128xf32>, vector<128x256xf32>, vector<8x256xf32> -> vector<8x256xf32>
    %c0_3 = arith.constant 0 : index
    %c0_4 = arith.constant 0 : index
    %3 = vector.load %arg4[%c0_3, %c0_4] : memref<1x256xf32, #tpu.memory_space<vmem>>, vector<1x256xf32>
    %4 = vector.broadcast %3 : vector<1x256xf32> to vector<8x256xf32>
    %5 = arith.addf %2, %4 : vector<8x256xf32>
    %6 = vector.extract_strided_slice %5 {offsets = [0, 0], sizes = [8, 128], strides = [1, 1]} : vector<8x256xf32> to vector<8x128xf32>
    %cst_5 = arith.constant 0.000000e+00 : f32
    %7 = vector.broadcast %cst_5 : f32 to vector<8x128xf32>
    %8 = arith.maximumf %6, %7 : vector<8x128xf32>
    %9 = vector.extract_strided_slice %5 {offsets = [0, 128], sizes = [8, 128], strides = [1, 1]} : vector<8x256xf32> to vector<8x128xf32>
    %10 = arith.negf %9 : vector<8x128xf32>
    %11 = math.exp %10 : vector<8x128xf32>
    %cst_6 = arith.constant 1.000000e+00 : f32
    %12 = vector.broadcast %cst_6 : f32 to vector<8x128xf32>
    %13 = arith.addf %12, %11 : vector<8x128xf32>
    %14 = arith.divf %12, %13 : vector<8x128xf32>
    %15 = arith.subf %8, %0 : vector<8x128xf32>
    %16 = arith.mulf %14, %15 : vector<8x128xf32>
    %17 = arith.addf %0, %16 : vector<8x128xf32>
    %c0_7 = arith.constant 0 : index
    %c0_8 = arith.constant 0 : index
    %18 = vector.load %arg5[%c0_7, %c0_8] : memref<8x128xf32, #tpu.memory_space<vmem>>, vector<8x128xf32>
    tpu.vector_store %arg5[%c0_7, %c0_8], %17 {strides = array<i32>} : memref<8x128xf32, #tpu.memory_space<vmem>>, vector<8x128xf32>,
    return
  }
  func.func @transform_0(%arg0: i32, %arg1: i32) -> (i32, i32) {
    %c0_i32 = arith.constant 0 : i32
    %c0_i32_0 = arith.constant 0 : i32
    return %arg0, %c0_i32 : i32, i32
  }
  func.func @transform_1(%arg0: i32, %arg1: i32) -> (i32, i32) {
    %c0_i32 = arith.constant 0 : i32
    %c0_i32_0 = arith.constant 0 : i32
    return %c0_i32, %arg1 : i32, i32
  }
  func.func @transform_2(%arg0: i32, %arg1: i32) -> (i32, i32) {
    %c0_i32 = arith.constant 0 : i32
    %c0_i32_0 = arith.constant 0 : i32
    return %c0_i32, %arg1 : i32, i32
  }
  func.func @transform_3(%arg0: i32, %arg1: i32) -> (i32, i32) {
    %c0_i32 = arith.constant 0 : i32
    return %arg0, %arg1 : i32, i32
  }
}

module attributes {stable_mosaic.version = 11 : i64} {
  func.func @highway_kernel(%arg0: i32, %arg1: i32, %arg2: memref<8x128xf32, #tpu.memory_space<vmem>>, %arg3: memref<128x256xf32, #tpu.memory_space<vmem>>, %arg4: memref<1x256xf32, #tpu.memory_space<vmem>>, %arg5: memref<8x128xf32, #tpu.memory_space<vmem>>) attributes {dimension_semantics = [#tpu.dimension_semantics<parallel>, #tpu.dimension_semantics<arbitrary>], iteration_bounds = array<i64: 2, 1>, scalar_prefetch = 0 : i64, scratch_operands = 0 : i64, tpu.core_type = #tpu.core_type<tc>, window_params = [{transform_indices = @transform_0, window_bounds = array<i64: 8, 128>}, {transform_indices = @transform_1, window_bounds = array<i64: 128, 256>}, {transform_indices = @transform_2, window_bounds = array<i64: 1, 256>}, {transform_indices = @transform_3, window_bounds = array<i64: 8, 128>}]} {
    %c0 = arith.constant 0 : index
    %c0_0 = arith.constant 0 : index
    %0 = vector.load %arg2[%c0, %c0_0] : memref<8x128xf32, #tpu.memory_space<vmem>>, vector<8x128xf32>
    %c0_1 = arith.constant 0 : index
    %c0_2 = arith.constant 0 : index
    %1 = vector.load %arg3[%c0_1, %c0_2] : memref<128x256xf32, #tpu.memory_space<vmem>>, vector<128x256xf32>
    %cst = arith.constant dense<0.000000e+00> : vector<8x256xf32>
    %2 = tpu.matmul %0, %1, %cst {dimension_numbers = #tpu.dot_dimension_numbers<[1], [0], [0], [1], [0, 0, 1, 1], [], []>} : vector<8x128xf32>, vector<128x256xf32>, vector<8x256xf32> -> vector<8x256xf32>
    %c0_3 = arith.constant 0 : index
    %c0_4 = arith.constant 0 : index
    %3 = vector.load %arg4[%c0_3, %c0_4] : memref<1x256xf32, #tpu.memory_space<vmem>>, vector<1x256xf32>
    %4 = vector.broadcast %3 : vector<1x256xf32> to vector<8x256xf32>
    %5 = arith.addf %2, %4 : vector<8x256xf32>
    %6 = vector.extract_strided_slice %5 {offsets = [0, 0], sizes = [8, 128], strides = [1, 1]} : vector<8x256xf32> to vector<8x128xf32>
    %cst_5 = arith.constant 0.000000e+00 : f32
    %7 = vector.broadcast %cst_5 : f32 to vector<8x128xf32>
    %8 = arith.maximumf %6, %7 : vector<8x128xf32>
    %9 = vector.extract_strided_slice %5 {offsets = [0, 128], sizes = [8, 128], strides = [1, 1]} : vector<8x256xf32> to vector<8x128xf32>
    %10 = arith.negf %9 : vector<8x128xf32>
    %11 = math.exp %10 : vector<8x128xf32>
    %cst_6 = arith.constant 1.000000e+00 : f32
    %12 = vector.broadcast %cst_6 : f32 to vector<8x128xf32>
    %13 = arith.addf %12, %11 : vector<8x128xf32>
    %14 = arith.divf %12, %13 : vector<8x128xf32>
    %15 = arith.subf %8, %0 : vector<8x128xf32>
    %16 = arith.mulf %14, %15 : vector<8x128xf32>
    %17 = arith.addf %0, %16 : vector<8x128xf32>
    %c0_7 = arith.constant 0 : index
    %c0_8 = arith.constant 0 : index
    %18 = vector.load %arg5[%c0_7, %c0_8] : memref<8x128xf32, #tpu.memory_space<vmem>>, vector<8x128xf32>
    tpu.vector_store %arg5[%c0_7, %c0_8], %17 {strides = array<i32>} : memref<8x128xf32, #tpu.memory_space<vmem>>, vector<8x128xf32>,
    return
  }
  func.func @transform_0(%arg0: i32, %arg1: i32) -> (i32, i32) {
    %c0_i32 = arith.constant 0 : i32
    %c0_i32_0 = arith.constant 0 : i32
    return %arg0, %c0_i32 : i32, i32
  }
  func.func @transform_1(%arg0: i32, %arg1: i32) -> (i32, i32) {
    %c0_i32 = arith.constant 0 : i32
    %c0_i32_0 = arith.constant 0 : i32
    return %c0_i32, %arg1 : i32, i32
  }
  func.func @transform_2(%arg0: i32, %arg1: i32) -> (i32, i32) {
    %c0_i32 = arith.constant 0 : i32
    %c0_i32_0 = arith.constant 0 : i32
    return %c0_i32, %arg1 : i32, i32
  }
  func.func @transform_3(%arg0: i32, %arg1: i32) -> (i32, i32) {
    %c0_i32 = arith.constant 0 : i32
    return %arg0, %arg1 : i32, i32
  }
}

</mosaic_0001>

<bundles_post_ra>
// kernel: tpu_custom_call.1
= control target key start
LH: loop header
LB: loop body
LE: loop exit
PB: predicated region body
PF: predicated region fallthrough
CT: control target
= control target key end

     0   :  { %8 = vsyncpa [#allocation3], 0  ;;  %s1013_s0 = inlined_call_operand.hbm [shape: f32[16,128], index: 0, kind: input, shape index: {}]   ;;  %s1014_s1 = inlined_call_operand.hbm [shape: f32[128,256], index: 1, kind: input, shape index: {}]   ;;  %s1015_s2 = inlined_call_operand.vmem [shape: f32[1,256], index: 2, kind: input, shape index: {}]   ;;  %s1016_s3 = inlined_call_operand.hbm [shape: f32[16,128], index: 3, kind: output, shape index: {}]  }
   0x1   :  { %10 = vsyncpa [#allocation3 + $0x1], 0 }
   0x2   :  { %11 = vsyncpa [#allocation6], 0 }
   0x3   :  { %12 = vsyncpa [#allocation4], 0 }
   0x4   :  { %14 = vsyncpa [#allocation4 + $0x1], 0  ;;  %s789_s12 = smov 0   ;;  %s791_s13 = smov 0  }
   0x5   :  { %s793_s14 = smov 0   ;;  %s795_s15 = smov 0  }
   0x6   :  { %s797_s16 = smov 0   ;;  %s799_s17 = smov 0  }
   0x7 LB: > { %s488_s18 = sadd.s32 4294967295, %s761_s17   ;;  %s489_s19 = sadd.s32 4294967294, %s761_s17   ;;  %s761_s17 = sphi %s799_s17, %s20_s17   ;;  %s757_s16 = sphi %s797_s16, %s1040_s16   ;;  %s753_s15 = sphi %s795_s15, %s1039_s15   ;;  %s749_s14 = sphi %s793_s14, %s1038_s14   ;;  %s745_s13 = sphi %s791_s13, %s1037_s13   ;;  %s741_s12 = sphi %s789_s12, %s1036_s12  }
   0x8   : > { %p52_p0 = scmp.ne.s32.totalorder %s745_s13, %s741_s12  ;;  %p823_p1 = scmp.eq.s32.totalorder %s488_s18, 0 }
   0x9   : > { %p827_p2 = scmp.eq.s32.totalorder %s488_s18, 1  ;;  %p136_p3 = scmp.eq.s32.totalorder %s489_s19, 1 }
   0xa   : > { %s1021_s20 = scalar_select %p823_p1, 1, 0 }
   0xb   : > { %s1022_s21 = scalar_select %p827_p2, 1, 0 }
   0xc   : > { %p833_p4 = por %p823_p1, %p52_p0  ;;  %p490_p5 = scmp.ge.s32.totalorder %s761_s17, 1 }
   0xd   : > { %p838_p6 = por %p136_p3, %p52_p0  ;;  %p143_p7 = scmp.lt.s32.totalorder %s761_s17, 3 }
   0xe   : > { %s1023_s22 = scalar_select %p833_p4, 1, 0 }
   0xf   : > { %s1024_s23 = scalar_select %p838_p6, 1, 0 }
  0x10   : > { %p843_p8 = pnand %p490_p5, %p143_p7  ;;  %s763_s25 = smov [#allocation5]  }
  0x11   : > { %s158_s26 = sshll.u32 %s763_s25, 4  ;;  %s32_s28 = sadd.s32 1, %s757_s16  ;;  %s159_s26 = int_to_ptr.vmem [resolvable:$true] %s158_s26 }
  0x12   : > { %s1025_s24 = scalar_select %p843_p8, 1, 0 }
  0x13   : > { %p545_p9 = pneg %p843_p8  ;;  %s617_s4 = scalar_lea.hbm %s1014_s1, 4096 }
  0x14   : > { %p618_p12 = scmp.ne.s32.totalorder %s1014_s1, %s617_s4  ;;  %p624_p5 = scmp.lt.u32.totalorder %s617_s4, %s1014_s1 }
  0x15   : > { %p852_p11 = pnand %p545_p9, %p823_p1 }
  0x17   : > { %p619_p13 = pneg %p852_p11 }
  0x19   : > { %p620_p0 = pnand %p619_p13, %p618_p12 }
  0x1b   : > { %p621_p3 = pneg %p620_p0 }
  0x1d   : > { %p626_p7 = pnand %p624_p5, %p621_p3 }
  0x1f   : > { %629 = shalt.err (!%p626_p7)
}
  0x20   : > { %s630_s9 = scalar_lea.vmem %s159_s26, 4096  ;;  %p638_p1 = scmp.lt.s32.totalorder %s159_s26, %s159_s26 }
  0x21   : > { %p631_p9 = scmp.ne.s32.totalorder %s159_s26, %s630_s9  ;;  %p639_p4 = scmp.lt.s32.totalorder %s630_s9, %s630_s9 }
  0x23   : > { %p633_p10 = pnand %p631_p9, %p619_p13  ;;  %p640_p8 = por %p639_p4, %p638_p1 }
  0x25   : > { %p634_p6 = pneg %p633_p10 }
  0x27   : > { %p641_p2 = pnand %p640_p8, %p634_p6 }
  0x29   : > { %644 = shalt.err (!%p641_p2)
}
  0x2a   : > { %s764_s10 = smov 256   ;;  %s765_s11 = smov 16  }
  0x2b   : > { %548 = dma.hbm_to_vmem [thread:$0]  (!%p852_p11), %s1014_s1, 4096, %s159_s26, [#allocation6], %s764_s10, %s764_s10, %s765_s11  }
  0x2c   : > { %p34_p1 = scmp.ge.s32.totalorder %s32_s28, 2  ;;  %s39_s25 = sadd.s32 1, %s749_s14 }
  0x2d   : > { %p46_p2 = scmp.ne.s32.totalorder %s749_s14, %s745_s13  ;;  %p47_p4 = scmp.eq.s32.totalorder %s761_s17, 0 }
  0x2e   : > { %s1042_s28 = smov (%p34_p1, %s32_s28), 0  ;;  %p1028_p8 = scmp.ne.s32.totalorder %s1022_s21, 0 }
  0x2f   : > { %p879_p6 = por %p47_p4, %p46_p2  ;;  %s36_s27 = ssub.s32 %s757_s16, %s1042_s28 }
  0x30   : > { %p885_p10 = por %p1028_p8, %p46_p2  ;;  %p558_p12 = scmp.lt.s32.totalorder %s761_s17, 2 }
  0x31   : > { %p37_p11 = scmp.eq.s32.totalorder %s36_s27, 0  ;;  %s180_s26 = sand.u32 1, %s749_s14  }
  0x32   : > { %s494_s4 = sshll.u32 %s180_s26, 3  ;;  %s495_s6 = sshll.u32 %s757_s16, 7 }
  0x33   : > { %s894_s5 = scalar_select %p37_p11, %s749_s14, %s39_s25  }
  0x34   : > { %s900_s9 = scalar_lea.hbm %s1013_s0, %s495_s6  ;;  %s184_s21 = scalar_lea.vmem [#allocation2], %s494_s4 }
  0x35   : > { %s191_s10 = sshll.u32 %s184_s21, 4  ;;  %p906_p13 = pnand %p558_p12, %p879_p6  ;;  %s902_s10 = int_to_ptr.vmem [resolvable:$true] %s191_s10 }
  0x36   : > { %s181_s18 = scalar_lea.sflag [#allocation3], %s180_s26  ;;  %s645_s19 = scalar_lea.hbm %s900_s9, 128 }
  0x37   : > { %p646_p0 = scmp.ne.s32.totalorder %s900_s9, %s645_s19  ;;  %p647_p3 = pneg %p906_p13 }
  0x38   : > { %s650_s4 = scalar_lea.hbm %s1013_s0, 256  ;;  %p651_p9 = scmp.lt.u32.totalorder %s900_s9, %s1013_s0 }
  0x39   : > { %p648_p5 = pnand %p647_p3, %p646_p0  ;;  %p652_p1 = scmp.lt.u32.totalorder %s650_s4, %s645_s19 }
  0x3a   : > { %p654_p4 = scmp.lt.u32.totalorder %s645_s19, %s900_s9 }
  0x3b   : > { %p649_p7 = pneg %p648_p5  ;;  %p653_p2 = por %p652_p1, %p651_p9 }
  0x3d   : > { %p655_p6 = por %p654_p4, %p653_p2 }
  0x3f   : > { %p656_p8 = pnand %p655_p6, %p649_p7 }
  0x41   : > { %659 = shalt.err (!%p656_p8)
}
  0x42   : > { %s660_s26 = scalar_lea.vmem %s902_s10, 128  ;;  %s766_s7 = smov [#allocation2]  }
  0x43   : > { %p661_p12 = scmp.ne.s32.totalorder %s902_s10, %s660_s26  ;;  %s665_s8 = sshll.u32 %s766_s7, 4  ;;  %s666_s8 = int_to_ptr.vmem [resolvable:$false] %s665_s8 }
  0x44   : > { %s667_s21 = scalar_lea.vmem %s666_s8, 256  ;;  %p668_p5 = scmp.lt.s32.totalorder %s902_s10, %s666_s8 }
  0x45   : > { %p663_p11 = pnand %p661_p12, %p647_p3  ;;  %p669_p9 = scmp.lt.s32.totalorder %s667_s21, %s660_s26 }
  0x47   : > { %p664_p0 = pneg %p663_p11  ;;  %p670_p1 = por %p669_p9, %p668_p5 }
  0x49   : > { %p671_p2 = pnand %p670_p1, %p664_p0 }
  0x4b   : > { %674 = shalt.err (!%p671_p2)
}
  0x4c   : > { %552 = dma.hbm_to_vmem [thread:$0]  (!%p906_p13), %s900_s9, 128, %s902_s10, %s181_s18  }
  0x4d   : > { %p1031_p7 = scmp.ne.s32.totalorder %s1025_s24, 0 }
  0x4e   : > { %s938_s19 = sand.u32 (!%p1031_p7), 1, %s745_s13   ;;  %p1032_p3 = scmp.ne.s32.totalorder (!%p1031_p7), %s1023_s22, 0 }
  0x4f   : > { %200 = sbr.rel (%p1031_p7) target bundleno = 384 (0x180), region = 32  ;;  %s497_s25 = sshll.u32 (!%p1031_p7), %s938_s19, 3 }
  0x50   : > { %s203_s27 = scalar_lea.sflag (!%p1031_p7), [#allocation3], %s938_s19  ;;  %s944_s4 = scalar_lea.vmem (!%p1031_p7), [#allocation2], %s497_s25 }
  0x56   : > { %728 = dma.done.wait (%p1032_p3), %s203_s27, 128  }
  0x57   : > { %730 = vsyncadd (%p1032_p3), %s203_s27, 4294967168  ;;  %p1033_p13 = scmp.ne.s32.totalorder %s1021_s20, 0 }
  0x59   : > { %732 = dma.done.wait (%p1033_p13), [#allocation6], 4096  }
  0x5a   : > { %734 = vsyncadd (%p1033_p13), [#allocation6], 4294963200  ;;  %v767_v0 = vmov 0.0   ;;  %v245_v1 = vld [vmem:[#allocation5 + $0x8] sm:$0xff]  ;;  %v247_v2 = vld [vmem:[#allocation5 + $0x18] sm:$0xff]  ;;  %v278_v50 = vlaneseq  ;;  %s502_s24 = sshll.u32 %s753_s15, 7 }
  0x5b   : > { %352 = vmatprep.mubr.f32.mxu0 %v767_v0  ;;  %v244_v3 = vld [vmem:[#allocation5] sm:$0xff]  ;;  %v505_v4 = vpack.c.bf16 %v247_v2, %v245_v1  ;;  %v246_v5 = vld [vmem:[#allocation5 + $0x10] sm:$0xff]  ;;  %v249_v6 = vld [vmem:[#allocation5 + $0x28] sm:$0xff]  ;;  %s236_s9 = scalar_lea.vmem [#allocation7], %s497_s25  ;;  %s964_s29 = scalar_lea.hbm %s1016_s3, %s502_s24 }
  0x5c   : > { %v251_v7 = vld [vmem:[#allocation5 + $0x38] sm:$0xff]  ;;  %v507_v8 = vpack.c.bf16 %v246_v5, %v244_v3  ;;  %v248_v10 = vld [vmem:[#allocation5 + $0x20] sm:$0xff]  ;;  %v250_v11 = vld [vmem:[#allocation5 + $0x30] sm:$0xff]  ;;  %v279_v51 = vshrl.u32 %v278_v50, 7  ;;  %s385_s10 = sshll.u32 %s236_s9, 4  ;;  %s371_s6 = scalar_lea.sflag [#allocation4], %s938_s19  ;;  %s966_s10 = int_to_ptr.vmem [resolvable:$true] %s385_s10 }
  0x5d   : > { %v509_v9 = vpack.c.bf16 %v251_v7, %v249_v6  ;;  %v253_v12 = vld [vmem:[#allocation5 + $0x48] sm:$0xff]  ;;  %506 = vmatprep.subr.bf16.mxu0 %v505_v4  ;;  %v255_v13 = vld [vmem:[#allocation5 + $0x58] sm:$0xff]  ;;  %v511_v14 = vpack.c.bf16 %v250_v11, %v248_v10  ;;  %v252_v16 = vld [vmem:[#allocation5 + $0x40] sm:$0xff]  ;;  %s675_s26 = scalar_lea.vmem %s966_s10, 128  ;;  %s768_s15 = smov [#allocation7]  }
  0x5e   : > { %508 = vmatpush1.bf16.msra.mxu0 %v507_v8  ;;  %v513_v15 = vpack.c.bf16 %v255_v13, %v253_v12  ;;  %v254_v17 = vld [vmem:[#allocation5 + $0x50] sm:$0xff]  ;;  %v257_v18 = vld [vmem:[#allocation5 + $0x68] sm:$0xff]  ;;  %v259_v19 = vld [vmem:[#allocation5 + $0x78] sm:$0xff]  ;;  %v284_v52 = vsub.s32 1, %v279_v51  ;;  %v280_v59 = vsub.s32 0, %v279_v51  ;;  %p676_p4 = scmp.ne.s32.totalorder %s966_s10, %s675_s26  ;;  %s679_s7 = sshll.u32 %s768_s15, 4  ;;  %s680_s7 = int_to_ptr.vmem [resolvable:$false] %s679_s7 }
  0x5f   : > { %510 = vmatprep.subr.bf16.mxu0 %v509_v9  ;;  %v515_v20 = vpack.c.bf16 %v254_v17, %v252_v16  ;;  %v517_v21 = vpack.c.bf16 %v259_v19, %v257_v18  ;;  %v256_v22 = vld [vmem:[#allocation5 + $0x60] sm:$0xff]  ;;  %v258_v23 = vld [vmem:[#allocation5 + $0x70] sm:$0xff]  ;;  %v261_v24 = vld [vmem:[#allocation5 + $0x88] sm:$0xff]  ;;  %s681_s8 = scalar_lea.vmem %s680_s7, 256  ;;  %p682_p12 = scmp.lt.s32.totalorder %s966_s10, %s680_s7 }
  0x60   : > { %v263_v25 = vld [vmem:[#allocation5 + $0x98] sm:$0xff]  ;;  %v519_v26 = vpack.c.bf16 %v258_v23, %v256_v22  ;;  %v260_v28 = vld [vmem:[#allocation5 + $0x80] sm:$0xff]  ;;  %v262_v29 = vld [vmem:[#allocation5 + $0x90] sm:$0xff]  ;;  %p677_p6 = pnand %p676_p4, %p885_p10  ;;  %p683_p11 = scmp.lt.s32.totalorder %s681_s8, %s675_s26 }
  0x61   : > { %v521_v27 = vpack.c.bf16 %v263_v25, %v261_v24  ;;  %v265_v30 = vld [vmem:[#allocation5 + $0xa8] sm:$0xff]  ;;  %v267_v31 = vld [vmem:[#allocation5 + $0xb8] sm:$0xff]  ;;  %v523_v32 = vpack.c.bf16 %v262_v29, %v260_v28  ;;  %v264_v34 = vld [vmem:[#allocation5 + $0xa0] sm:$0xff] }
  0x62   : > { %512 = vmatpush1.bf16.msra.mxu0 %v511_v14  ;;  %v525_v33 = vpack.c.bf16 %v267_v31, %v265_v30  ;;  %v266_v35 = vld [vmem:[#allocation5 + $0xb0] sm:$0xff]  ;;  %v269_v36 = vld [vmem:[#allocation5 + $0xc8] sm:$0xff]  ;;  %v271_v37 = vld [vmem:[#allocation5 + $0xd8] sm:$0xff]  ;;  %p678_p8 = pneg %p677_p6  ;;  %p684_p0 = por %p683_p11, %p682_p12 }
  0x63   : > { %514 = vmatprep.subr.bf16.mxu0 %v513_v15  ;;  %v527_v38 = vpack.c.bf16 %v266_v35, %v264_v34  ;;  %v529_v39 = vpack.c.bf16 %v271_v37, %v269_v36  ;;  %v268_v40 = vld [vmem:[#allocation5 + $0xc0] sm:$0xff]  ;;  %v270_v41 = vld [vmem:[#allocation5 + $0xd0] sm:$0xff]  ;;  %v273_v42 = vld [vmem:[#allocation5 + $0xe8] sm:$0xff] }
  0x64   : > { %v275_v43 = vld [vmem:[#allocation5 + $0xf8] sm:$0xff]  ;;  %v531_v44 = vpack.c.bf16 %v270_v41, %v268_v40  ;;  %v272_v46 = vld [vmem:[#allocation5 + $0xe0] sm:$0xff]  ;;  %v274_v47 = vld [vmem:[#allocation5 + $0xf0] sm:$0xff]  ;;  %p685_p5 = pnand %p684_p0, %p678_p8 }
  0x65   : > { %v533_v45 = vpack.c.bf16 %v275_v43, %v273_v42  ;;  %v535_v48 = vpack.c.bf16 %v274_v47, %v272_v46  ;;  %v243_v49 = vld [vmem:[%s944_s4] sm:$0xff] }
  0x66   : > { %516 = vmatpush1.bf16.msra.mxu0 %v515_v20  ;;  %v276_v53 = vld [vmem:[%s1015_s2] sm:$0x3] }
  0x67   : > { %518 = vmatprep.subr.bf16.mxu0 %v517_v21  ;;  %v285_v54 = vrot.slane %v276_v53, %v284_v52  ;;  %v281_v61 = vrot.slane %v276_v53, %v280_v59 }
  0x6a   : > { %520 = vmatpush1.bf16.msra.mxu0 %v519_v26 }
  0x6b   : > { %522 = vmatprep.subr.bf16.mxu0 %v521_v27 }
  0x6e   : > { %524 = vmatpush1.bf16.msra.mxu0 %v523_v32 }
  0x6f   : > { %526 = vmatprep.subr.bf16.mxu0 %v525_v33 }
  0x72   : > { %528 = vmatpush1.bf16.msra.mxu0 %v527_v38 }
  0x73   : > { %530 = vmatprep.subr.bf16.mxu0 %v529_v39 }
  0x76   : > { %532 = vmatpush1.bf16.msra.mxu0 %v531_v44 }
  0x77   : > { %534 = vmatprep.subr.bf16.mxu0 %v533_v45 }
  0x7a   : > { %536 = vmatpush1.bf16.msra.mxu0 %v535_v48 }
  0x7d   : > { %353 = vmatmul.mubr.f32.vlgmr.msra.gmra.mrb[0].mxu0 %v243_v49 }
 0x150   : > { %v354_v55 = vpop.f32.mrb[0].mxu0 }
 0x151   : > { %v356_v56 = vpop.f32.mrb[1].mxu0  ;;  %v355_v63 = vadd.f32 %v354_v55, %v281_v61 }
 0x152   : > { %v357_v57 = vadd.f32 %v356_v56, %v285_v54 }
 0x153   : > { %v359_v0 = vmax.f32 %v355_v63, 0.0 }
 0x154   : > { %v500_v58 = vmul.f32 -1.442695, %v357_v57 }
 0x155   : > { %v366_v1 = vsub.f32 %v359_v0, %v243_v49 }
 0x156   : > { %613 = vpow2.f32 %v500_v58 }
 0x160   : > { %v614_v60 = vpop.eup %613 }
 0x161   : > { %v363_v62 = vadd.f32 1.0, %v614_v60 }
 0x163   : > { %615 = vrcp.f32 %v363_v62 }
 0x16d   : > { %v616_v2 = vpop.eup %615 }
 0x16e   : > { %v367_v3 = vmul.f32 %v616_v2, %v366_v1 }
 0x170   : > { %v368_v4 = vadd.f32 %v367_v3, %v243_v49 }
 0x172   : > { %369 = vst [vmem:[%s236_s9] sm:$0xff] %v368_v4 }
 0x173   : > { %688 = shalt.err (!%p685_p5)
}
 0x174   : > { %s689_s21 = scalar_lea.hbm %s964_s29, 128  ;;  %s693_s27 = scalar_lea.hbm %s1016_s3, 256 }
 0x175   : > { %p690_p9 = scmp.ne.s32.totalorder %s964_s29, %s689_s21  ;;  %p694_p7 = scmp.lt.u32.totalorder %s964_s29, %s1016_s3 }
 0x176   : > { %p695_p3 = scmp.lt.u32.totalorder %s693_s27, %s689_s21  ;;  %p697_p4 = scmp.lt.u32.totalorder %s689_s21, %s964_s29 }
 0x177   : > { %p691_p1 = pnand %p690_p9, %p885_p10 }
 0x178   : > { %p696_p13 = por %p695_p3, %p694_p7 }
 0x179   : > { %p692_p2 = pneg %p691_p1 }
 0x17a   : > { %p698_p6 = por %p697_p4, %p696_p13 }
 0x17c   : > { %p699_p8 = pnand %p698_p6, %p692_p2 }
 0x17e   : > { %702 = shalt.err (!%p699_p8)
}
 0x17f   : > { %543 = dma.vmem_to_hbm [thread:$0]  (%p885_p10), %s966_s10, 128, %s964_s29, %s371_s6  }
 0x180 PF: > { %s397_s22 = sand.u32 1, %s741_s12   ;;  %p1034_p12 = scmp.ne.s32.totalorder %s1024_s23, 0 }
 0x181   : > { %p1035_p11 = scmp.ge.s32.totalorder %s761_s17, 2  ;;  %s398_s24 = scalar_lea.sflag [#allocation4], %s397_s22 }
 0x183   : > { %p554_p0 = pnand %p1035_p11, %p1034_p12 }
 0x185   : > { %736 = dma.done.wait (!%p554_p0), %s398_s24, 128  }
 0x186   : > { %738 = vsyncadd (!%p554_p0), %s398_s24, 4294967168  ;;  %s20_s17 = sadd.s32 1, %s761_s17   ;;  %s1036_s12 = smov %s745_s13 }
 0x187   : > { %p17_p5 = scmp.ge.s32.totalorder %s20_s17, 4   ;;  %s1037_s13 = smov %s749_s14 }
 0x188   : > { %s1038_s14 = smov %s894_s5  ;;  %s1039_s15 = smov %s757_s16 }
 0x189   : > { %s1040_s16 = smov %s1042_s28  ;;  %19 = sbr.rel (!%p17_p5) target bundleno = 7 (0x7), region = 85 }
 0x190   :  { %403 = vsyncpa [#allocation3], 1 }
 0x191   :  { %405 = vsyncpa [#allocation3 + $0x1], 1 }
 0x192   :  { %406 = vsyncpa [#allocation6], 1 }
 0x193   :  { %407 = vsyncpa [#allocation4], 1 }
 0x194   :  { %409 = vsyncpa [#allocation4 + $0x1], 1 }

// kernel: tpu_custom_call.1
= control target key start
LH: loop header
LB: loop body
LE: loop exit
PB: predicated region body
PF: predicated region fallthrough
CT: control target
= control target key end

     0   :  { %8 = vsyncpa [#allocation3], 0  ;;  %s1013_s0 = inlined_call_operand.hbm [shape: f32[16,128], index: 0, kind: input, shape index: {}]   ;;  %s1014_s1 = inlined_call_operand.hbm [shape: f32[128,256], index: 1, kind: input, shape index: {}]   ;;  %s1015_s2 = inlined_call_operand.vmem [shape: f32[1,256], index: 2, kind: input, shape index: {}]   ;;  %s1016_s3 = inlined_call_operand.hbm [shape: f32[16,128], index: 3, kind: output, shape index: {}]  }
   0x1   :  { %10 = vsyncpa [#allocation3 + $0x1], 0 }
   0x2   :  { %11 = vsyncpa [#allocation6], 0 }
   0x3   :  { %12 = vsyncpa [#allocation4], 0 }
   0x4   :  { %14 = vsyncpa [#allocation4 + $0x1], 0  ;;  %s789_s12 = smov 0   ;;  %s791_s13 = smov 0  }
   0x5   :  { %s793_s14 = smov 0   ;;  %s795_s15 = smov 0  }
   0x6   :  { %s797_s16 = smov 0   ;;  %s799_s17 = smov 0  }
   0x7 LB: > { %s488_s18 = sadd.s32 4294967295, %s761_s17   ;;  %s489_s19 = sadd.s32 4294967294, %s761_s17   ;;  %s761_s17 = sphi %s799_s17, %s20_s17   ;;  %s757_s16 = sphi %s797_s16, %s1040_s16   ;;  %s753_s15 = sphi %s795_s15, %s1039_s15   ;;  %s749_s14 = sphi %s793_s14, %s1038_s14   ;;  %s745_s13 = sphi %s791_s13, %s1037_s13   ;;  %s741_s12 = sphi %s789_s12, %s1036_s12  }
   0x8   : > { %p52_p0 = scmp.ne.s32.totalorder %s745_s13, %s741_s12  ;;  %p823_p1 = scmp.eq.s32.totalorder %s488_s18, 0 }
   0x9   : > { %p827_p2 = scmp.eq.s32.totalorder %s488_s18, 1  ;;  %p136_p3 = scmp.eq.s32.totalorder %s489_s19, 1 }
   0xa   : > { %s1021_s20 = scalar_select %p823_p1, 1, 0 }
   0xb   : > { %s1022_s21 = scalar_select %p827_p2, 1, 0 }
   0xc   : > { %p833_p4 = por %p823_p1, %p52_p0  ;;  %p490_p5 = scmp.ge.s32.totalorder %s761_s17, 1 }
   0xd   : > { %p838_p6 = por %p136_p3, %p52_p0  ;;  %p143_p7 = scmp.lt.s32.totalorder %s761_s17, 3 }
   0xe   : > { %s1023_s22 = scalar_select %p833_p4, 1, 0 }
   0xf   : > { %s1024_s23 = scalar_select %p838_p6, 1, 0 }
  0x10   : > { %p843_p8 = pnand %p490_p5, %p143_p7  ;;  %s763_s25 = smov [#allocation5]  }
  0x11   : > { %s158_s26 = sshll.u32 %s763_s25, 4  ;;  %s32_s28 = sadd.s32 1, %s757_s16  ;;  %s159_s26 = int_to_ptr.vmem [resolvable:$true] %s158_s26 }
  0x12   : > { %s1025_s24 = scalar_select %p843_p8, 1, 0 }
  0x13   : > { %p545_p9 = pneg %p843_p8  ;;  %s617_s4 = scalar_lea.hbm %s1014_s1, 4096 }
  0x14   : > { %p618_p12 = scmp.ne.s32.totalorder %s1014_s1, %s617_s4  ;;  %p624_p5 = scmp.lt.u32.totalorder %s617_s4, %s1014_s1 }
  0x15   : > { %p852_p11 = pnand %p545_p9, %p823_p1 }
  0x17   : > { %p619_p13 = pneg %p852_p11 }
  0x19   : > { %p620_p0 = pnand %p619_p13, %p618_p12 }
  0x1b   : > { %p621_p3 = pneg %p620_p0 }
  0x1d   : > { %p626_p7 = pnand %p624_p5, %p621_p3 }
  0x1f   : > { %629 = shalt.err (!%p626_p7)
}
  0x20   : > { %s630_s9 = scalar_lea.vmem %s159_s26, 4096  ;;  %p638_p1 = scmp.lt.s32.totalorder %s159_s26, %s159_s26 }
  0x21   : > { %p631_p9 = scmp.ne.s32.totalorder %s159_s26, %s630_s9  ;;  %p639_p4 = scmp.lt.s32.totalorder %s630_s9, %s630_s9 }
  0x23   : > { %p633_p10 = pnand %p631_p9, %p619_p13  ;;  %p640_p8 = por %p639_p4, %p638_p1 }
  0x25   : > { %p634_p6 = pneg %p633_p10 }
  0x27   : > { %p641_p2 = pnand %p640_p8, %p634_p6 }
  0x29   : > { %644 = shalt.err (!%p641_p2)
}
  0x2a   : > { %s764_s10 = smov 256   ;;  %s765_s11 = smov 16  }
  0x2b   : > { %548 = dma.hbm_to_vmem [thread:$0]  (!%p852_p11), %s1014_s1, 4096, %s159_s26, [#allocation6], %s764_s10, %s764_s10, %s765_s11  }
  0x2c   : > { %p34_p1 = scmp.ge.s32.totalorder %s32_s28, 2  ;;  %s39_s25 = sadd.s32 1, %s749_s14 }
  0x2d   : > { %p46_p2 = scmp.ne.s32.totalorder %s749_s14, %s745_s13  ;;  %p47_p4 = scmp.eq.s32.totalorder %s761_s17, 0 }
  0x2e   : > { %s1042_s28 = smov (%p34_p1, %s32_s28), 0  ;;  %p1028_p8 = scmp.ne.s32.totalorder %s1022_s21, 0 }
  0x2f   : > { %p879_p6 = por %p47_p4, %p46_p2  ;;  %s36_s27 = ssub.s32 %s757_s16, %s1042_s28 }
  0x30   : > { %p885_p10 = por %p1028_p8, %p46_p2  ;;  %p558_p12 = scmp.lt.s32.totalorder %s761_s17, 2 }
  0x31   : > { %p37_p11 = scmp.eq.s32.totalorder %s36_s27, 0  ;;  %s180_s26 = sand.u32 1, %s749_s14  }
  0x32   : > { %s494_s4 = sshll.u32 %s180_s26, 3  ;;  %s495_s6 = sshll.u32 %s757_s16, 7 }
  0x33   : > { %s894_s5 = scalar_select %p37_p11, %s749_s14, %s39_s25  }
  0x34   : > { %s900_s9 = scalar_lea.hbm %s1013_s0, %s495_s6  ;;  %s184_s21 = scalar_lea.vmem [#allocation2], %s494_s4 }
  0x35   : > { %s191_s10 = sshll.u32 %s184_s21, 4  ;;  %p906_p13 = pnand %p558_p12, %p879_p6  ;;  %s902_s10 = int_to_ptr.vmem [resolvable:$true] %s191_s10 }
  0x36   : > { %s181_s18 = scalar_lea.sflag [#allocation3], %s180_s26  ;;  %s645_s19 = scalar_lea.hbm %s900_s9, 128 }
  0x37   : > { %p646_p0 = scmp.ne.s32.totalorder %s900_s9, %s645_s19  ;;  %p647_p3 = pneg %p906_p13 }
  0x38   : > { %s650_s4 = scalar_lea.hbm %s1013_s0, 256  ;;  %p651_p9 = scmp.lt.u32.totalorder %s900_s9, %s1013_s0 }
  0x39   : > { %p648_p5 = pnand %p647_p3, %p646_p0  ;;  %p652_p1 = scmp.lt.u32.totalorder %s650_s4, %s645_s19 }
  0x3a   : > { %p654_p4 = scmp.lt.u32.totalorder %s645_s19, %s900_s9 }
  0x3b   : > { %p649_p7 = pneg %p648_p5  ;;  %p653_p2 = por %p652_p1, %p651_p9 }
  0x3d   : > { %p655_p6 = por %p654_p4, %p653_p2 }
  0x3f   : > { %p656_p8 = pnand %p655_p6, %p649_p7 }
  0x41   : > { %659 = shalt.err (!%p656_p8)
}
  0x42   : > { %s660_s26 = scalar_lea.vmem %s902_s10, 128  ;;  %s766_s7 = smov [#allocation2]  }
  0x43   : > { %p661_p12 = scmp.ne.s32.totalorder %s902_s10, %s660_s26  ;;  %s665_s8 = sshll.u32 %s766_s7, 4  ;;  %s666_s8 = int_to_ptr.vmem [resolvable:$false] %s665_s8 }
  0x44   : > { %s667_s21 = scalar_lea.vmem %s666_s8, 256  ;;  %p668_p5 = scmp.lt.s32.totalorder %s902_s10, %s666_s8 }
  0x45   : > { %p663_p11 = pnand %p661_p12, %p647_p3  ;;  %p669_p9 = scmp.lt.s32.totalorder %s667_s21, %s660_s26 }
  0x47   : > { %p664_p0 = pneg %p663_p11  ;;  %p670_p1 = por %p669_p9, %p668_p5 }
  0x49   : > { %p671_p2 = pnand %p670_p1, %p664_p0 }
  0x4b   : > { %674 = shalt.err (!%p671_p2)
}
  0x4c   : > { %552 = dma.hbm_to_vmem [thread:$0]  (!%p906_p13), %s900_s9, 128, %s902_s10, %s181_s18  }
  0x4d   : > { %p1031_p7 = scmp.ne.s32.totalorder %s1025_s24, 0 }
  0x4e   : > { %s938_s19 = sand.u32 (!%p1031_p7), 1, %s745_s13   ;;  %p1032_p3 = scmp.ne.s32.totalorder (!%p1031_p7), %s1023_s22, 0 }
  0x4f   : > { %200 = sbr.rel (%p1031_p7) target bundleno = 384 (0x180), region = 32  ;;  %s497_s25 = sshll.u32 (!%p1031_p7), %s938_s19, 3 }
  0x50   : > { %s203_s27 = scalar_lea.sflag (!%p1031_p7), [#allocation3], %s938_s19  ;;  %s944_s4 = scalar_lea.vmem (!%p1031_p7), [#allocation2], %s497_s25 }
  0x56   : > { %728 = dma.done.wait (%p1032_p3), %s203_s27, 128  }
  0x57   : > { %730 = vsyncadd (%p1032_p3), %s203_s27, 4294967168  ;;  %p1033_p13 = scmp.ne.s32.totalorder %s1021_s20, 0 }
  0x59   : > { %732 = dma.done.wait (%p1033_p13), [#allocation6], 4096  }
  0x5a   : > { %734 = vsyncadd (%p1033_p13), [#allocation6], 4294963200  ;;  %v767_v0 = vmov 0.0   ;;  %v245_v1 = vld [vmem:[#allocation5 + $0x8] sm:$0xff]  ;;  %v247_v2 = vld [vmem:[#allocation5 + $0x18] sm:$0xff]  ;;  %v278_v50 = vlaneseq  ;;  %s502_s24 = sshll.u32 %s753_s15, 7 }
  0x5b   : > { %352 = vmatprep.mubr.f32.mxu0 %v767_v0  ;;  %v244_v3 = vld [vmem:[#allocation5] sm:$0xff]  ;;  %v505_v4 = vpack.c.bf16 %v247_v2, %v245_v1  ;;  %v246_v5 = vld [vmem:[#allocation5 + $0x10] sm:$0xff]  ;;  %v249_v6 = vld [vmem:[#allocation5 + $0x28] sm:$0xff]  ;;  %s236_s9 = scalar_lea.vmem [#allocation7], %s497_s25  ;;  %s964_s29 = scalar_lea.hbm %s1016_s3, %s502_s24 }
  0x5c   : > { %v251_v7 = vld [vmem:[#allocation5 + $0x38] sm:$0xff]  ;;  %v507_v8 = vpack.c.bf16 %v246_v5, %v244_v3  ;;  %v248_v10 = vld [vmem:[#allocation5 + $0x20] sm:$0xff]  ;;  %v250_v11 = vld [vmem:[#allocation5 + $0x30] sm:$0xff]  ;;  %v279_v51 = vshrl.u32 %v278_v50, 7  ;;  %s385_s10 = sshll.u32 %s236_s9, 4  ;;  %s371_s6 = scalar_lea.sflag [#allocation4], %s938_s19  ;;  %s966_s10 = int_to_ptr.vmem [resolvable:$true] %s385_s10 }
  0x5d   : > { %v509_v9 = vpack.c.bf16 %v251_v7, %v249_v6  ;;  %v253_v12 = vld [vmem:[#allocation5 + $0x48] sm:$0xff]  ;;  %506 = vmatprep.subr.bf16.mxu0 %v505_v4  ;;  %v255_v13 = vld [vmem:[#allocation5 + $0x58] sm:$0xff]  ;;  %v511_v14 = vpack.c.bf16 %v250_v11, %v248_v10  ;;  %v252_v16 = vld [vmem:[#allocation5 + $0x40] sm:$0xff]  ;;  %s675_s26 = scalar_lea.vmem %s966_s10, 128  ;;  %s768_s15 = smov [#allocation7]  }
  0x5e   : > { %508 = vmatpush1.bf16.msra.mxu0 %v507_v8  ;;  %v513_v15 = vpack.c.bf16 %v255_v13, %v253_v12  ;;  %v254_v17 = vld [vmem:[#allocation5 + $0x50] sm:$0xff]  ;;  %v257_v18 = vld [vmem:[#allocation5 + $0x68] sm:$0xff]  ;;  %v259_v19 = vld [vmem:[#allocation5 + $0x78] sm:$0xff]  ;;  %v284_v52 = vsub.s32 1, %v279_v51  ;;  %v280_v59 = vsub.s32 0, %v279_v51  ;;  %p676_p4 = scmp.ne.s32.totalorder %s966_s10, %s675_s26  ;;  %s679_s7 = sshll.u32 %s768_s15, 4  ;;  %s680_s7 = int_to_ptr.vmem [resolvable:$false] %s679_s7 }
  0x5f   : > { %510 = vmatprep.subr.bf16.mxu0 %v509_v9  ;;  %v515_v20 = vpack.c.bf16 %v254_v17, %v252_v16  ;;  %v517_v21 = vpack.c.bf16 %v259_v19, %v257_v18  ;;  %v256_v22 = vld [vmem:[#allocation5 + $0x60] sm:$0xff]  ;;  %v258_v23 = vld [vmem:[#allocation5 + $0x70] sm:$0xff]  ;;  %v261_v24 = vld [vmem:[#allocation5 + $0x88] sm:$0xff]  ;;  %s681_s8 = scalar_lea.vmem %s680_s7, 256  ;;  %p682_p12 = scmp.lt.s32.totalorder %s966_s10, %s680_s7 }
  0x60   : > { %v263_v25 = vld [vmem:[#allocation5 + $0x98] sm:$0xff]  ;;  %v519_v26 = vpack.c.bf16 %v258_v23, %v256_v22  ;;  %v260_v28 = vld [vmem:[#allocation5 + $0x80] sm:$0xff]  ;;  %v262_v29 = vld [vmem:[#allocation5 + $0x90] sm:$0xff]  ;;  %p677_p6 = pnand %p676_p4, %p885_p10  ;;  %p683_p11 = scmp.lt.s32.totalorder %s681_s8, %s675_s26 }
  0x61   : > { %v521_v27 = vpack.c.bf16 %v263_v25, %v261_v24  ;;  %v265_v30 = vld [vmem:[#allocation5 + $0xa8] sm:$0xff]  ;;  %v267_v31 = vld [vmem:[#allocation5 + $0xb8] sm:$0xff]  ;;  %v523_v32 = vpack.c.bf16 %v262_v29, %v260_v28  ;;  %v264_v34 = vld [vmem:[#allocation5 + $0xa0] sm:$0xff] }
  0x62   : > { %512 = vmatpush1.bf16.msra.mxu0 %v511_v14  ;;  %v525_v33 = vpack.c.bf16 %v267_v31, %v265_v30  ;;  %v266_v35 = vld [vmem:[#allocation5 + $0xb0] sm:$0xff]  ;;  %v269_v36 = vld [vmem:[#allocation5 + $0xc8] sm:$0xff]  ;;  %v271_v37 = vld [vmem:[#allocation5 + $0xd8] sm:$0xff]  ;;  %p678_p8 = pneg %p677_p6  ;;  %p684_p0 = por %p683_p11, %p682_p12 }
  0x63   : > { %514 = vmatprep.subr.bf16.mxu0 %v513_v15  ;;  %v527_v38 = vpack.c.bf16 %v266_v35, %v264_v34  ;;  %v529_v39 = vpack.c.bf16 %v271_v37, %v269_v36  ;;  %v268_v40 = vld [vmem:[#allocation5 + $0xc0] sm:$0xff]  ;;  %v270_v41 = vld [vmem:[#allocation5 + $0xd0] sm:$0xff]  ;;  %v273_v42 = vld [vmem:[#allocation5 + $0xe8] sm:$0xff] }
  0x64   : > { %v275_v43 = vld [vmem:[#allocation5 + $0xf8] sm:$0xff]  ;;  %v531_v44 = vpack.c.bf16 %v270_v41, %v268_v40  ;;  %v272_v46 = vld [vmem:[#allocation5 + $0xe0] sm:$0xff]  ;;  %v274_v47 = vld [vmem:[#allocation5 + $0xf0] sm:$0xff]  ;;  %p685_p5 = pnand %p684_p0, %p678_p8 }
  0x65   : > { %v533_v45 = vpack.c.bf16 %v275_v43, %v273_v42  ;;  %v535_v48 = vpack.c.bf16 %v274_v47, %v272_v46  ;;  %v243_v49 = vld [vmem:[%s944_s4] sm:$0xff] }
  0x66   : > { %516 = vmatpush1.bf16.msra.mxu0 %v515_v20  ;;  %v276_v53 = vld [vmem:[%s1015_s2] sm:$0x3] }
  0x67   : > { %518 = vmatprep.subr.bf16.mxu0 %v517_v21  ;;  %v285_v54 = vrot.slane %v276_v53, %v284_v52  ;;  %v281_v61 = vrot.slane %v276_v53, %v280_v59 }
  0x6a   : > { %520 = vmatpush1.bf16.msra.mxu0 %v519_v26 }
  0x6b   : > { %522 = vmatprep.subr.bf16.mxu0 %v521_v27 }
  0x6e   : > { %524 = vmatpush1.bf16.msra.mxu0 %v523_v32 }
  0x6f   : > { %526 = vmatprep.subr.bf16.mxu0 %v525_v33 }
  0x72   : > { %528 = vmatpush1.bf16.msra.mxu0 %v527_v38 }
  0x73   : > { %530 = vmatprep.subr.bf16.mxu0 %v529_v39 }
  0x76   : > { %532 = vmatpush1.bf16.msra.mxu0 %v531_v44 }
  0x77   : > { %534 = vmatprep.subr.bf16.mxu0 %v533_v45 }
  0x7a   : > { %536 = vmatpush1.bf16.msra.mxu0 %v535_v48 }
  0x7d   : > { %353 = vmatmul.mubr.f32.vlgmr.msra.gmra.mrb[0].mxu0 %v243_v49 }
 0x150   : > { %v354_v55 = vpop.f32.mrb[0].mxu0 }
 0x151   : > { %v356_v56 = vpop.f32.mrb[1].mxu0  ;;  %v355_v63 = vadd.f32 %v354_v55, %v281_v61 }
 0x152   : > { %v357_v57 = vadd.f32 %v356_v56, %v285_v54 }
 0x153   : > { %v359_v0 = vmax.f32 %v355_v63, 0.0 }
 0x154   : > { %v500_v58 = vmul.f32 -1.442695, %v357_v57 }
 0x155   : > { %v366_v1 = vsub.f32 %v359_v0, %v243_v49 }
 0x156   : > { %613 = vpow2.f32 %v500_v58 }
 0x160   : > { %v614_v60 = vpop.eup %613 }
 0x161   : > { %v363_v62 = vadd.f32 1.0, %v614_v60 }
 0x163   : > { %615 = vrcp.f32 %v363_v62 }
 0x16d   : > { %v616_v2 = vpop.eup %615 }
 0x16e   : > { %v367_v3 = vmul.f32 %v616_v2, %v366_v1 }
 0x170   : > { %v368_v4 = vadd.f32 %v367_v3, %v243_v49 }
 0x172   : > { %369 = vst [vmem:[%s236_s9] sm:$0xff] %v368_v4 }
 0x173   : > { %688 = shalt.err (!%p685_p5)
}
 0x174   : > { %s689_s21 = scalar_lea.hbm %s964_s29, 128  ;;  %s693_s27 = scalar_lea.hbm %s1016_s3, 256 }
 0x175   : > { %p690_p9 = scmp.ne.s32.totalorder %s964_s29, %s689_s21  ;;  %p694_p7 = scmp.lt.u32.totalorder %s964_s29, %s1016_s3 }
 0x176   : > { %p695_p3 = scmp.lt.u32.totalorder %s693_s27, %s689_s21  ;;  %p697_p4 = scmp.lt.u32.totalorder %s689_s21, %s964_s29 }
 0x177   : > { %p691_p1 = pnand %p690_p9, %p885_p10 }
 0x178   : > { %p696_p13 = por %p695_p3, %p694_p7 }
 0x179   : > { %p692_p2 = pneg %p691_p1 }
 0x17a   : > { %p698_p6 = por %p697_p4, %p696_p13 }
 0x17c   : > { %p699_p8 = pnand %p698_p6, %p692_p2 }
 0x17e   : > { %702 = shalt.err (!%p699_p8)
}
 0x17f   : > { %543 = dma.vmem_to_hbm [thread:$0]  (%p885_p10), %s966_s10, 128, %s964_s29, %s371_s6  }
 0x180 PF: > { %s397_s22 = sand.u32 1, %s741_s12   ;;  %p1034_p12 = scmp.ne.s32.totalorder %s1024_s23, 0 }
 0x181   : > { %p1035_p11 = scmp.ge.s32.totalorder %s761_s17, 2  ;;  %s398_s24 = scalar_lea.sflag [#allocation4], %s397_s22 }
 0x183   : > { %p554_p0 = pnand %p1035_p11, %p1034_p12 }
 0x185   : > { %736 = dma.done.wait (!%p554_p0), %s398_s24, 128  }
 0x186   : > { %738 = vsyncadd (!%p554_p0), %s398_s24, 4294967168  ;;  %s20_s17 = sadd.s32 1, %s761_s17   ;;  %s1036_s12 = smov %s745_s13 }
 0x187   : > { %p17_p5 = scmp.ge.s32.totalorder %s20_s17, 4   ;;  %s1037_s13 = smov %s749_s14 }
 0x188   : > { %s1038_s14 = smov %s894_s5  ;;  %s1039_s15 = smov %s757_s16 }
 0x189   : > { %s1040_s16 = smov %s1042_s28  ;;  %19 = sbr.rel (!%p17_p5) target bundleno = 7 (0x7), region = 85 }
 0x190   :  { %403 = vsyncpa [#allocation3], 1 }
 0x191   :  { %405 = vsyncpa [#allocation3 + $0x1], 1 }
 0x192   :  { %406 = vsyncpa [#allocation6], 1 }
 0x193   :  { %407 = vsyncpa [#allocation4], 1 }
 0x194   :  { %409 = vsyncpa [#allocation4 + $0x1], 1 }

</bundles_post_ra>
